<compile_context>
chip_gen: v5e
topology: v5e:2x2
jax: 0.10.0
libtpu: 0.0.40
codegen_flags: <defaults>
</compile_context>

<pallas_src>
import jax
import jax.numpy as jnp
from jax.experimental import pallas as pl
from jax.experimental.pallas import tpu as pltpu


def _sigmoid(x):
    return 1.0 / (1.0 + jnp.exp(-x))


# ----------------------------- fused CBAM kernel -----------------------------
def _cbam_kernel(x_ref, w1_ref, w2_ref, m_ref, o_ref):
    """One batch element.

    x_ref/o_ref: (C, H*W); w1_ref: (Cr, C); w2_ref: (C, Cr);
    m_ref: (2*H*W, H*W) dense spatial-conv operator (Toeplitz form).
    """
    x = x_ref[...]                                           # (C, HW) f32

    # ---------------- Channel attention (shared squeeze-excite MLP) ---------
    avg_c = jnp.mean(x, axis=1, keepdims=True)               # (C, 1) lane reduce
    max_c = jnp.max(x, axis=1, keepdims=True)                # (C, 1)
    pooled = jnp.concatenate([avg_c, max_c], axis=1)         # (C, 2): one MLP pass
    hid = jnp.maximum(
        jnp.dot(w1_ref[...], pooled, preferred_element_type=jnp.float32), 0.0)
    ca = jnp.dot(w2_ref[...], hid,
                 preferred_element_type=jnp.float32)         # (C, 2)
    ca_scale = _sigmoid(ca[:, 0:1] + ca[:, 1:2])             # fc(avg)+fc(max)
    x = x * ca_scale                                         # lane broadcast

    # ---------------- Spatial attention --------------------------------------
    avg_s = jnp.mean(x, axis=0, keepdims=True)               # (1, HW)
    max_s = jnp.max(x, axis=0, keepdims=True)                # (1, HW)
    sm = jnp.concatenate([avg_s, max_s], axis=1)             # (1, 2*HW)
    logits = jnp.dot(sm, m_ref[...],
                     preferred_element_type=jnp.float32)     # (1, HW) lane-dense
    sa_scale = _sigmoid(logits)
    o_ref[...] = x * sa_scale                                # sublane broadcast


def cbam_forward(x, ca_w1, ca_w2, sa_conv_mat):
    """x: (B, C, H, W) f32 -> (B, C, H, W) f32."""
    B, C, H, W = x.shape
    HW = H * W
    Cr = ca_w1.shape[0]
    x2 = x.reshape(B, C, HW)                 # contiguous reshape, no transpose
    y2 = pl.pallas_call(
        _cbam_kernel,
        grid=(B,),
        in_specs=[
            pl.BlockSpec((None, C, HW), lambda b: (b, 0, 0)),   # per-batch tile
            pl.BlockSpec((Cr, C), lambda b: (0, 0)),
            pl.BlockSpec((C, Cr), lambda b: (0, 0)),
            pl.BlockSpec((2 * HW, HW), lambda b: (0, 0)),       # constant block
        ],
        out_specs=pl.BlockSpec((None, C, HW), lambda b: (b, 0, 0)),
        out_shape=jax.ShapeDtypeStruct((B, C, HW), jnp.float32),
        compiler_params=pltpu.CompilerParams(
            dimension_semantics=("parallel",)),   # megacore sharding on v7x
    )(x2, ca_w1, ca_w2, sa_conv_mat)
    return y2.reshape(B, C, H, W)


# ------------- host-side repack: 7x7 spatial conv as a dense matmul ----------
def build_spatial_conv_matrix(sa_w, H, W):
    """Dense operator M (2*H*W, H*W) such that

        (concat([avg_flat, max_flat], -1) @ M)  ==  flatten(
            Conv2d(2, 1, K, padding=K//2, bias=False)(stack([avg, max])))

    Exact zero-padded Toeplitz form; pure weight repacking done once at init.
    """
    K = sa_w.shape[-1]
    p = K // 2
    di = jnp.arange(H)[:, None] - jnp.arange(H)[None, :] + p   # di[y, i] = y-i+p
    dj = jnp.arange(W)[:, None] - jnp.arange(W)[None, :] + p   # dj[x, j] = x-j+p
    vi = (di >= 0) & (di < K)
    vj = (dj >= 0) & (dj < K)
    dic = jnp.clip(di, 0, K - 1)
    djc = jnp.clip(dj, 0, K - 1)
    mats = []
    for c in range(2):
        t = sa_w[c][dic]                      # (H, H, K)    [y, i, kj]
        t = t[:, :, djc]                      # (H, H, W, W) [y, i, x, j]
        t = jnp.where(vi[:, :, None, None] & vj[None, None, :, :], t, 0.0)
        t = jnp.transpose(t, (0, 2, 1, 3)).reshape(H * W, H * W)  # (y*W+x, i*W+j)
        mats.append(t)
    return jnp.concatenate(mats, axis=0).astype(jnp.float32)     # (2*H*W, H*W)


# ------------------------------- module wrapper -------------------------------
class CBAMPallas:
    """Pallas-TPU CBAM:  x -> ChannelAttention -> SpatialAttention -> out."""

    def __init__(self, channel, reduction=16, kernel_size=7,
                 key=jax.random.PRNGKey(0)):
        C = channel
        Cr = max(C // reduction, 1)
        K = kernel_size
        k1, k2, k3 = jax.random.split(key, 3)
        # ChannelAttention.fc: two bias-free 1x1 convs, squeezed to matrices.
        self.ca_w1 = (jax.random.normal(k1, (Cr, C), jnp.float32)
                      * jnp.sqrt(2.0 / C))
        self.ca_w2 = (jax.random.normal(k2, (C, Cr), jnp.float32)
                      * jnp.sqrt(2.0 / Cr))
        # SpatialAttention.conv: Conv2d(2, 1, K, padding=K//2, bias=False).
        self.sa_w = (jax.random.normal(k3, (2, K, K), jnp.float32)
                     * jnp.sqrt(2.0 / (2 * K * K)))
        self._conv_mat_cache = {}   # (H, W) -> dense spatial-conv operator

    def _conv_mat(self, H, W):
        if (H, W) not in self._conv_mat_cache:
            self._conv_mat_cache[(H, W)] = build_spatial_conv_matrix(
                self.sa_w, H, W)
        return self._conv_mat_cache[(H, W)]

    def __call__(self, x):
        B, C, H, W = x.shape
        return cbam_forward(x, self.ca_w1, self.ca_w2, self._conv_mat(H, W))


# ------------------------- pure-JAX (XLA) reference ---------------------------
def cbam_reference(x, ca_w1, ca_w2, sa_w):
    """Matches the PyTorch CBAM forward exactly (used for correctness check)."""
    K = sa_w.shape[-1]
    p = K // 2
    avg = jnp.mean(x, axis=(2, 3))
    mx = jnp.max(x, axis=(2, 3))

    def fc(v):
        return jnp.maximum(v @ ca_w1.T, 0.0) @ ca_w2.T

    ca = jax.nn.sigmoid(fc(avg) + fc(mx))
    x1 = x * ca[:, :, None, None]
    avg_s = jnp.mean(x1, axis=1, keepdims=True)
    max_s = jnp.max(x1, axis=1, keepdims=True)
    sm = jnp.concatenate([avg_s, max_s], axis=1)                # (B, 2, H, W)
    conv = jax.lax.conv_general_dilated(
        sm, sa_w[None], window_strides=(1, 1),
        padding=((p, p), (p, p)),
        dimension_numbers=("NCHW", "OIHW", "NCHW"))             # (B, 1, H, W)
    return x1 * jax.nn.sigmoid(conv)


if __name__ == "__main__":
    B, C, H, W = 2, 32, 16, 16

    model = CBAMPallas(channel=C, reduction=16, kernel_size=7,
                       key=jax.random.PRNGKey(0))
    x = jax.random.normal(jax.random.PRNGKey(0), (B, C, H, W), jnp.float32)

    y = jax.block_until_ready(model(x))
    assert y.shape == (B, C, H, W)
    assert bool(jnp.all(jnp.isfinite(y)))

    # Correctness vs a pure-JAX reference of the PyTorch module.
    y_ref = cbam_reference(x, model.ca_w1, model.ca_w2, model.sa_w)
    max_err = float(jnp.max(jnp.abs(y - y_ref)))
    assert bool(jnp.allclose(y, y_ref, rtol=1e-3, atol=1e-3)), max_err

    print("KERNEL_OK")
</pallas_src>

<mosaic_0001>
module attributes {stable_mosaic.version = 11 : i64} {
  func.func @_cbam_kernel(%arg0: i32, %arg1: memref<1x32x256xf32, #tpu.memory_space<vmem>>, %arg2: memref<2x32xf32, #tpu.memory_space<vmem>>, %arg3: memref<32x2xf32, #tpu.memory_space<vmem>>, %arg4: memref<512x256xf32, #tpu.memory_space<vmem>>, %arg5: memref<1x32x256xf32, #tpu.memory_space<vmem>>) attributes {dimension_semantics = [#tpu.dimension_semantics<parallel>], iteration_bounds = array<i64: 2>, scalar_prefetch = 0 : i64, scratch_operands = 0 : i64, tpu.core_type = #tpu.core_type<tc>, window_params = [{transform_indices = @transform_0, window_bounds = array<i64: 1, 32, 256>}, {pipeline_mode = #tpu.pipeline_mode<synchronous>, transform_indices = @transform_1, window_bounds = array<i64: 2, 32>}, {pipeline_mode = #tpu.pipeline_mode<synchronous>, transform_indices = @transform_2, window_bounds = array<i64: 32, 2>}, {pipeline_mode = #tpu.pipeline_mode<synchronous>, transform_indices = @transform_3, window_bounds = array<i64: 512, 256>}, {transform_indices = @transform_4, window_bounds = array<i64: 1, 32, 256>}]} {
    %c0 = arith.constant 0 : index
    %c0_0 = arith.constant 0 : index
    %c0_1 = arith.constant 0 : index
    %0 = vector.load %arg1[%c0, %c0_0, %c0_1] : memref<1x32x256xf32, #tpu.memory_space<vmem>>, vector<1x32x256xf32>
    %1 = vector.shape_cast %0 : vector<1x32x256xf32> to vector<32x256xf32>
    %cst = arith.constant dense<0.000000e+00> : vector<32xf32>
    %2 = vector.multi_reduction <add>, %1, %cst [1] : vector<32x256xf32> to vector<32xf32>
    %3 = vector.shape_cast %2 : vector<32xf32> to vector<32x1xf32>
    %cst_2 = arith.constant 2.560000e+02 : f32
    %4 = vector.broadcast %cst_2 : f32 to vector<32x1xf32>
    %5 = arith.divf %3, %4 : vector<32x1xf32>
    %cst_3 = arith.constant dense<0xFF800000> : vector<32xf32>
    %6 = vector.multi_reduction <maximumf>, %1, %cst_3 [1] : vector<32x256xf32> to vector<32xf32>
    %7 = vector.shape_cast %6 : vector<32xf32> to vector<32x1xf32>
    %8 = tpu.concatenate %5, %7 in 1 : vector<32x1xf32>, vector<32x1xf32> -> vector<32x2xf32>
    %c0_4 = arith.constant 0 : index
    %c0_5 = arith.constant 0 : index
    %9 = vector.load %arg2[%c0_4, %c0_5] : memref<2x32xf32, #tpu.memory_space<vmem>>, vector<2x32xf32>
    %cst_6 = arith.constant dense<0.000000e+00> : vector<2x2xf32>
    %10 = tpu.matmul %9, %8, %cst_6 {dimension_numbers = #tpu.dot_dimension_numbers<[1], [0], [0], [1], [0, 0, 1, 1], [], []>} : vector<2x32xf32>, vector<32x2xf32>, vector<2x2xf32> -> vector<2x2xf32>
    %cst_7 = arith.constant 0.000000e+00 : f32
    %11 = vector.broadcast %cst_7 : f32 to vector<2x2xf32>
    %12 = arith.maximumf %10, %11 : vector<2x2xf32>
    %c0_8 = arith.constant 0 : index
    %c0_9 = arith.constant 0 : index
    %13 = vector.load %arg3[%c0_8, %c0_9] : memref<32x2xf32, #tpu.memory_space<vmem>>, vector<32x2xf32>
    %cst_10 = arith.constant dense<0.000000e+00> : vector<32x2xf32>
    %14 = tpu.matmul %13, %12, %cst_10 {dimension_numbers = #tpu.dot_dimension_numbers<[1], [0], [0], [1], [0, 0, 1, 1], [], []>} : vector<32x2xf32>, vector<2x2xf32>, vector<32x2xf32> -> vector<32x2xf32>
    %15 = vector.extract_strided_slice %14 {offsets = [0, 0], sizes = [32, 1], strides = [1, 1]} : vector<32x2xf32> to vector<32x1xf32>
    %16 = vector.extract_strided_slice %14 {offsets = [0, 1], sizes = [32, 1], strides = [1, 1]} : vector<32x2xf32> to vector<32x1xf32>
    %17 = arith.addf %15, %16 : vector<32x1xf32>
    %cst_11 = arith.constant 0.000000e+00 : f32
    %18 = vector.broadcast %cst_11 : f32 to vector<32x1xf32>
    %19 = arith.subf %18, %17 : vector<32x1xf32>
    %20 = math.exp %19 : vector<32x1xf32>
    %cst_12 = arith.constant 1.000000e+00 : f32
    %21 = vector.broadcast %cst_12 : f32 to vector<32x1xf32>
    %22 = arith.addf %21, %20 : vector<32x1xf32>
    %cst_13 = arith.constant 1.000000e+00 : f32
    %23 = vector.broadcast %cst_13 : f32 to vector<32x1xf32>
    %24 = arith.divf %23, %22 : vector<32x1xf32>
    %25 = vector.broadcast %24 : vector<32x1xf32> to vector<32x256xf32>
    %26 = arith.mulf %1, %25 : vector<32x256xf32>
    %cst_14 = arith.constant dense<0.000000e+00> : vector<256xf32>
    %27 = vector.multi_reduction <add>, %26, %cst_14 [0] : vector<32x256xf32> to vector<256xf32>
    %28 = vector.shape_cast %27 : vector<256xf32> to vector<1x256xf32>
    %cst_15 = arith.constant 3.200000e+01 : f32
    %29 = vector.broadcast %cst_15 : f32 to vector<1x256xf32>
    %30 = arith.divf %28, %29 : vector<1x256xf32>
    %cst_16 = arith.constant dense<0xFF800000> : vector<256xf32>
    %31 = vector.multi_reduction <maximumf>, %26, %cst_16 [0] : vector<32x256xf32> to vector<256xf32>
    %32 = vector.shape_cast %31 : vector<256xf32> to vector<1x256xf32>
    %33 = tpu.concatenate %30, %32 in 1 : vector<1x256xf32>, vector<1x256xf32> -> vector<1x512xf32>
    %c0_17 = arith.constant 0 : index
    %c0_18 = arith.constant 0 : index
    %34 = vector.load %arg4[%c0_17, %c0_18] : memref<512x256xf32, #tpu.memory_space<vmem>>, vector<512x256xf32>
    %cst_19 = arith.constant dense<0.000000e+00> : vector<1x256xf32>
    %35 = tpu.matmul %33, %34, %cst_19 {dimension_numbers = #tpu.dot_dimension_numbers<[1], [0], [0], [1], [0, 0, 1, 1], [], []>} : vector<1x512xf32>, vector<512x256xf32>, vector<1x256xf32> -> vector<1x256xf32>
    %cst_20 = arith.constant 0.000000e+00 : f32
    %36 = vector.broadcast %cst_20 : f32 to vector<1x256xf32>
    %37 = arith.subf %36, %35 : vector<1x256xf32>
    %38 = math.exp %37 : vector<1x256xf32>
    %cst_21 = arith.constant 1.000000e+00 : f32
    %39 = vector.broadcast %cst_21 : f32 to vector<1x256xf32>
    %40 = arith.addf %39, %38 : vector<1x256xf32>
    %cst_22 = arith.constant 1.000000e+00 : f32
    %41 = vector.broadcast %cst_22 : f32 to vector<1x256xf32>
    %42 = arith.divf %41, %40 : vector<1x256xf32>
    %43 = vector.broadcast %42 : vector<1x256xf32> to vector<32x256xf32>
    %44 = arith.mulf %26, %43 : vector<32x256xf32>
    %c0_23 = arith.constant 0 : index
    %c0_24 = arith.constant 0 : index
    %c0_25 = arith.constant 0 : index
    %45 = vector.load %arg5[%c0_23, %c0_24, %c0_25] : memref<1x32x256xf32, #tpu.memory_space<vmem>>, vector<1x32x256xf32>
    %46 = vector.shape_cast %45 : vector<1x32x256xf32> to vector<32x256xf32>
    %47 = vector.shape_cast %44 : vector<32x256xf32> to vector<1x32x256xf32>
    tpu.vector_store %arg5[%c0_23, %c0_24, %c0_25], %47 {strides = array<i32>} : memref<1x32x256xf32, #tpu.memory_space<vmem>>, vector<1x32x256xf32>,
    return
  }
  func.func @transform_0(%arg0: i32) -> (i32, i32, i32) {
    %c0_i32 = arith.constant 0 : i32
    %c0_i32_0 = arith.constant 0 : i32
    %c0_i32_1 = arith.constant 0 : i32
    return %arg0, %c0_i32, %c0_i32_0 : i32, i32, i32
  }
  func.func @transform_1(%arg0: i32) -> (i32, i32) {
    %c0_i32 = arith.constant 0 : i32
    %c0_i32_0 = arith.constant 0 : i32
    %c0_i32_1 = arith.constant 0 : i32
    return %c0_i32, %c0_i32_0 : i32, i32
  }
  func.func @transform_2(%arg0: i32) -> (i32, i32) {
    %c0_i32 = arith.constant 0 : i32
    %c0_i32_0 = arith.constant 0 : i32
    %c0_i32_1 = arith.constant 0 : i32
    return %c0_i32, %c0_i32_0 : i32, i32
  }
  func.func @transform_3(%arg0: i32) -> (i32, i32) {
    %c0_i32 = arith.constant 0 : i32
    %c0_i32_0 = arith.constant 0 : i32
    %c0_i32_1 = arith.constant 0 : i32
    return %c0_i32, %c0_i32_0 : i32, i32
  }
  func.func @transform_4(%arg0: i32) -> (i32, i32, i32) {
    %c0_i32 = arith.constant 0 : i32
    %c0_i32_0 = arith.constant 0 : i32
    %c0_i32_1 = arith.constant 0 : i32
    return %arg0, %c0_i32, %c0_i32_0 : i32, i32, i32
  }
}

</mosaic_0001>

<bundles_post_ra>
// kernel: tpu_custom_call.1
= control target key start
LH: loop header
LB: loop body
LE: loop exit
PB: predicated region body
PF: predicated region fallthrough
CT: control target
= control target key end

     0   :  { %9 = vsyncpa [#allocation3], 0  ;;  %s1504_s0 = inlined_call_operand.hbm [shape: f32[2,32,256], index: 0, kind: input, shape index: {}]   ;;  %s1505_s1 = inlined_call_operand.vmem [shape: f32[2,32], index: 1, kind: input, shape index: {}]   ;;  %s1506_s2 = inlined_call_operand.vmem [shape: f32[32,2], index: 2, kind: input, shape index: {}]   ;;  %s1507_s3 = inlined_call_operand.hbm [shape: f32[512,256], index: 3, kind: input, shape index: {}]   ;;  %s1508_s4 = inlined_call_operand.hbm [shape: f32[2,32,256], index: 4, kind: output, shape index: {}]  }
   0x1   :  { %11 = vsyncpa [#allocation3 + $0x1], 0 }
   0x2   :  { %12 = vsyncpa [#allocation6], 0 }
   0x3   :  { %13 = vsyncpa [#allocation4], 0 }
   0x4   :  { %15 = vsyncpa [#allocation4 + $0x1], 0  ;;  %s1257_s15 = smov 0   ;;  %s1259_s16 = smov 0  }
   0x5   :  { %s1261_s17 = smov 0   ;;  %s1263_s18 = smov 0  }
   0x6 LB: > { %s1278_s19 = sadd.s32 4294967295, %s1221_s18   ;;  %s971_s20 = sadd.s32 4294967294, %s1221_s18   ;;  %s1221_s18 = sphi %s1263_s18, %s1518_s18   ;;  %s1217_s17 = sphi %s1261_s17, %s1517_s17   ;;  %s1213_s16 = sphi %s1259_s16, %s1516_s16   ;;  %s1209_s15 = sphi %s1257_s15, %s1515_s15  }
   0x7   : > { %p41_p0 = scmp.ne.s32.totalorder %s1213_s16, %s1209_s15  ;;  %p42_p1 = scmp.eq.s32.totalorder %s1278_s19, 0 }
   0x8   : > { %p128_p2 = scmp.eq.s32.totalorder %s1278_s19, 1  ;;  %p134_p3 = scmp.eq.s32.totalorder %s971_s20, 1 }
   0x9   : > { %p1287_p4 = por %p42_p1, %p41_p0  ;;  %p972_p5 = scmp.ge.s32.totalorder %s1221_s18, 1 }
   0xa   : > { %p1292_p6 = por %p134_p3, %p41_p0  ;;  %p141_p7 = scmp.lt.s32.totalorder %s1221_s18, 3 }
   0xb   : > { %s158_s25 = sshll.u32 %s1507_s3, 4  ;;  %s1223_s27 = smov [#allocation5]   ;;  %s159_s25 = int_to_ptr.hbm [resolvable:$true] %s158_s25 }
   0xc   : > { %p1300_p8 = pnand %p972_p5, %p141_p7  ;;  %s160_s28 = sshll.u32 %s1223_s27, 4  ;;  %s161_s28 = int_to_ptr.vmem [resolvable:$true] %s160_s28 }
   0xd   : > { %s1310_s29 = sadd.s32 1, %s1221_s18   ;;  %s1224_s30 = smov 256  }
   0xe   : > { %p1003_p9 = pneg %p1300_p8  ;;  %s1225_s5 = smov 16  }
   0xf   : > { %s25_s6 = ssub.s32 %s1221_s18, %s1310_s29  ;;  %s28_s7 = sadd.s32 1, %s1217_s17 }
  0x10   : > { %p1004_p10 = pnand %p1003_p9, %p42_p1  ;;  %p26_p12 = scmp.eq.s32.totalorder %s25_s6, 0 }
  0x11   : > { %p35_p13 = scmp.ne.s32.totalorder %s1217_s17, %s1213_s16  ;;  %p36_p0 = scmp.eq.s32.totalorder %s1221_s18, 0 }
  0x12   : > { %1006 = dma.hbm_to_vmem [thread:$0]  (!%p1004_p10), %s159_s25, 16384, %s161_s28, [#allocation6], %s1224_s30, %s1224_s30, %s1225_s5  }
  0x13   : > { %s1322_s8 = scalar_select %p26_p12, %s1217_s17, %s28_s7  }
  0x14   : > { %p1326_p3 = por %p128_p2, %p35_p13  ;;  %p1016_p5 = scmp.lt.s32.totalorder %s1221_s18, 2 }
  0x15   : > { %s174_s10 = sand.u32 1, %s1217_s17   ;;  %s993_s11 = sshll.u32 %s1221_s18, 6 }
  0x16   : > { %p37_p7 = por %p36_p0, %p35_p13  ;;  %s975_s12 = sshll.u32 %s174_s10, 6 }
  0x17   : > { %s183_s20 = scalar_lea.hbm %s1504_s0, %s993_s11  ;;  %s178_s24 = scalar_lea.vmem [#allocation2], %s975_s12 }
  0x18   : > { %s184_s23 = sshll.u32 %s183_s20, 4  ;;  %s186_s25 = sshll.u32 %s178_s24, 4  ;;  %s185_s23 = int_to_ptr.hbm [resolvable:$true] %s184_s23  ;;  %s187_s25 = int_to_ptr.vmem [resolvable:$true] %s186_s25 }
  0x19   : > { %p1336_p9 = pnand %p1016_p5, %p37_p7  ;;  %s175_s28 = scalar_lea.sflag [#allocation3], %s174_s10 }
  0x1a   : > { %s1121_s6 = sshra.s32 %s185_s23, 4  ;;  %s1128_s12 = scalar_lea.hbm %s1504_s0, 128  ;;  %s1122_s6 = int_to_ptr.hbm [resolvable:$true] %s1121_s6 }
  0x1b   : > { %s1123_s7 = scalar_lea.hbm %s1122_s6, 64  ;;  %p1125_p10 = pneg %p1336_p9 }
  0x1c   : > { %p1124_p2 = scmp.ne.s32.totalorder %s1122_s6, %s1123_s7  ;;  %p1129_p0 = scmp.lt.s32.totalorder %s1122_s6, %s1504_s0 }
  0x1d   : > { %p1130_p5 = scmp.lt.s32.totalorder %s1128_s12, %s1123_s7 }
  0x1e   : > { %p1126_p12 = pnand %p1125_p10, %p1124_p2 }
  0x1f   : > { %p1131_p7 = por %p1130_p5, %p1129_p0 }
  0x20   : > { %p1127_p13 = pneg %p1126_p12 }
  0x22   : > { %p1132_p11 = pnand %p1131_p7, %p1127_p13 }
  0x24   : > { %1135 = shalt.err (!%p1132_p11)
}
  0x25   : > { %1010 = dma.hbm_to_vmem [thread:$0]  (!%p1336_p9), %s185_s23, 1024, %s187_s25, %s175_s28, %s1224_s30, %s1224_s30, %s1225_s5  }
  0x26   : > { %198 = sbr.rel (%p1300_p8) target bundleno = 926 (0x39e), region = 36  ;;  %s1356_s10 = sand.u32 (!%p1300_p8), 1, %s1213_s16  }
  0x27   : > { %s979_s24 = sshll.u32 (!%p1300_p8), %s1356_s10, 6  ;;  %s201_s6 = scalar_lea.sflag (!%p1300_p8), [#allocation3], %s1356_s10 }
  0x28   : > { %s204_s7 = scalar_lea.vmem (!%p1300_p8), [#allocation2], %s979_s24 }
  0x2b   : > { %1196 = dma.done.wait (%p1287_p4), %s201_s6, 1024  }
  0x2c   : > { %1198 = vsyncadd (%p1287_p4), %s201_s6, 4294966272 }
  0x2d   : > { %1200 = dma.done.wait (%p42_p1), [#allocation6], 16384  }
  0x2e   : > { %1202 = vsyncadd (%p42_p1), [#allocation6], 4294950912  ;;  %v1370_v0 = vld [vmem:[%s204_s7 + $0x30] sm:$0xff]  ;;  %v1372_v1 = vld [vmem:[%s204_s7 + $0x38] sm:$0xff]  ;;  %v1226_v16 = vmov 256.0   ;;  %vm278_vm1 = vcmask 7168  }
  0x2f   : > { %v1374_v2 = vld [vmem:[%s204_s7 + $0x20] sm:$0xff]  ;;  %v252_v3 = vadd.f32 %v1372_v1, %v1370_v0  ;;  %v275_v4 = vmax.f32 %v1370_v0, %v1372_v1  ;;  %v1380_v5 = vld [vmem:[%s204_s7 + $0x28] sm:$0xff]  ;;  %v1384_v7 = vld [vmem:[%s204_s7 + $0x10] sm:$0xff]  ;;  %1063 = vrcp.f32 %v1226_v16  ;;  %vm284_vm2 = vcmask 261120   ;;  %s1227_s12 = smov 127   ;;  %s234_s14 = scalar_lea.vmem [#allocation7], %s979_s24 }
  0x30   : > { %v272_v6 = vmax.f32 %v1374_v2, %v1380_v5  ;;  %v1386_v8 = vld [vmem:[%s204_s7 + $0x18] sm:$0xff]  ;;  %v1388_v9 = vld [vmem:[%s204_s7] sm:$0xff]  ;;  %v1390_v10 = vld [vmem:[%s204_s7 + $0x8] sm:$0xff]  ;;  %v249_v11 = vadd.f32 %v1380_v5, %v1374_v2  ;;  %vm326_vm3 = vcmask 1041408   ;;  %vm313_vm4 = vcmask 15360   ;;  %s994_s20 = sshll.u32 %s1278_s19, 6 }
  0x31   : > { %253 = vadd.xlane.f32.xlu0 %v252_v3  ;;  %276 = vmax.xlane.f32.xlu1 %v275_v4  ;;  %v246_v12 = vadd.f32 %v1386_v8, %v1384_v7  ;;  %v243_v13 = vadd.f32 %v1390_v10, %v1388_v9  ;;  %v269_v14 = vmax.f32 %v1384_v7, %v1386_v8  ;;  %v283_v39 = vld [vmem:[%s1505_s1] sm:$0x3]  ;;  %v310_v43 = vld [vmem:[%s1506_s2 + $0x8] sm:$0xff]  ;;  %v311_v44 = vld [vmem:[%s1506_s2 + $0x10] sm:$0xff]  ;;  %v1228_v51 = vmov 0   ;;  %s884_s21 = scalar_lea.hbm %s1508_s4, %s994_s20  ;;  %s885_s26 = sshll.u32 %s234_s14, 4  ;;  %s886_s26 = int_to_ptr.vmem [resolvable:$true] %s885_s26 }
  0x32   : > { %273 = vmax.xlane.f32.xlu2 %v272_v6  ;;  %v266_v15 = vmax.f32 %v1388_v9, %v1390_v10  ;;  %v309_v42 = vld [vmem:[%s1506_s2] sm:$0xff]  ;;  %v312_v45 = vld [vmem:[%s1506_s2 + $0x18] sm:$0xff]  ;;  %1060 = vset.pattern.permute.xlu0 %v1228_v51  ;;  %s887_s24 = sshll.u32 %s884_s21, 4  ;;  %s873_s19 = scalar_lea.sflag [#allocation4], %s1356_s10  ;;  %s888_s24 = int_to_ptr.hbm [resolvable:$true] %s887_s24 }
  0x33   : > { %1061 = vset.pattern.permute.xlu2 %v1228_v51  ;;  %1062 = vset.pattern.permute.xlu1 %v1228_v51  ;;  %s1165_s30 = sshra.s32 %s888_s24, 4  ;;  %s1171_s27 = scalar_lea.hbm %s1508_s4, 128  ;;  %s1166_s30 = int_to_ptr.hbm [resolvable:$true] %s1165_s30 }
  0x34   : > { %s1167_s5 = scalar_lea.hbm %s1166_s30, 64  ;;  %p1172_p11 = scmp.lt.s32.totalorder %s1166_s30, %s1508_s4 }
  0x35   : > { %v1064_v17 = vpop.eup %1063  ;;  %p1168_p1 = scmp.ne.s32.totalorder %s1166_s30, %s1167_s5  ;;  %p1173_p9 = scmp.lt.s32.totalorder %s1171_s27, %s1167_s5 }
  0x36   : > { %v256_v18 = vmul.f32 256.0, %v1064_v17  ;;  %vm260_vm0 = vweird.f32 %v1064_v17 }
  0x37   : > { %p1169_p4 = pnand %p1168_p1, %p1326_p3  ;;  %p1174_p2 = por %p1173_p9, %p1172_p11 }
  0x38   : > { %v257_v19 = vsub.f32 1.0, %v256_v18 }
  0x39   : > { %250 = vadd.xlane.f32.xlu0 %v249_v11  ;;  %247 = vadd.xlane.f32.xlu1 %v246_v12  ;;  %p1170_p8 = pneg %p1169_p4 }
  0x3a   : > { %244 = vadd.xlane.f32.xlu2 %v243_v13  ;;  %v258_v20 = vmul.f32 %v1064_v17, %v257_v19 }
  0x3b   : > { %p1175_p10 = pnand %p1174_p2, %p1170_p8 }
  0x3c   : > { %v259_v21 = vadd.f32 %v1064_v17, %v258_v20 }
  0x3e   : > { %v261_v22 = vsel %vm260_vm0, %v1064_v17, %v259_v21 }
  0x41   : > { %270 = vmax.xlane.f32.xlu0 %v269_v14  ;;  %267 = vmax.xlane.f32.xlu1 %v266_v15 }
  0xa4   : > { %v254_v23 = vpop.xlane.xlu0 %253  ;;  %v277_v24 = vpop.xlane.xlu1 %276 }
  0xa5   : > { %v265_v25 = vmul.f32 %v261_v22, %v254_v23  ;;  %v274_v26 = vpop.xlane.xlu2 %273 }
  0xa7   : > { %v282_v27 = vsel %vm278_vm1, %v265_v25, %v277_v24 }
  0xa8   : > { %300 = vmatpush.msra.mxu0 %v282_v27 }
  0xac   : > { %v251_v28 = vpop.xlane.xlu0 %250  ;;  %v248_v29 = vpop.xlane.xlu1 %247 }
  0xad   : > { %v264_v30 = vmul.f32 %v261_v22, %v251_v28  ;;  %v245_v31 = vpop.xlane.xlu2 %244  ;;  %v263_v34 = vmul.f32 %v261_v22, %v248_v29 }
  0xae   : > { %v262_v33 = vmul.f32 %v261_v22, %v245_v31 }
  0xaf   : > { %v281_v32 = vsel %vm278_vm1, %v264_v30, %v274_v26 }
  0xb0   : > { %301 = vmatpush.msra.mxu0 %v281_v32 }
  0xb4   : > { %v271_v35 = vpop.xlane.xlu0 %270  ;;  %v268_v36 = vpop.xlane.xlu1 %267 }
  0xb5   : > { %v280_v37 = vsel %vm278_vm1, %v263_v34, %v271_v35  ;;  %v279_v38 = vsel %vm278_vm1, %v262_v33, %v268_v36 }
  0xb6   : > { %302 = vmatpush.msra.mxu0 %v280_v37 }
  0xb8   : > { %303 = vmatpush.msra.mxu0 %v279_v38 }
  0xb9   : > { %982 = vmatmul.msk.f32.vlgmr.msra.gmra.mxu0 %vm284_vm2, %v283_v39 }
 0x136   : > { %v305_v40 = vpop.f32.mrf.mxu0 }
 0x137   : > { %v308_v41 = vmax.f32 %v305_v40, 0.0 }
 0x139   : > { %983 = vmatpush.msk.msra.mxu1 %vm326_vm3, %v308_v41 }
 0x13a   : > { %984 = vmatmul.msk.f32.vlgmr.msra.gmra.mxu1 %vm313_vm4, %v309_v42 }
 0x142   : > { %985 = vmatmul.msk.f32.gmra.mxu1 %vm313_vm4, %v310_v43 }
 0x14a   : > { %986 = vmatmul.msk.f32.gmra.mxu1 %vm313_vm4, %v311_v44 }
 0x152   : > { %987 = vmatmul.msk.f32.gmra.mxu1 %vm313_vm4, %v312_v45 }
 0x1b7   : > { %v347_v46 = vpop.f32.mrf.mxu1 }
 0x1b8   : > { %363 = vrot.lane.b32.xlu2 %v347_v46, %s1227_s12 }
 0x1bf   : > { %v350_v47 = vpop.f32.mrf.mxu1 }
 0x1c0   : > { %365 = vrot.lane.b32.xlu0 %v350_v47, %s1227_s12 }
 0x1c7   : > { %v353_v48 = vpop.f32.mrf.mxu1 }
 0x1c8   : > { %367 = vrot.lane.b32.xlu1 %v353_v48, %s1227_s12 }
 0x1cf   : > { %v356_v49 = vpop.f32.mrf.mxu1 }
 0x1d0   : > { %369 = vrot.lane.b32.xlu2 %v356_v49, %s1227_s12 }
 0x212   : > { %v364_v50 = vpop.permute.xlu2 %363 }
 0x213   : > { %v375_v52 = vadd.f32 %v364_v50, %v347_v46 }
 0x215   : > { %v379_v53 = vsub.f32 0.0, %v375_v52 }
 0x217   : > { %v383_v54 = vmul.f32 1.442695, %v379_v53 }
 0x219   : > { %1065 = vpow2.f32 %v383_v54 }
 0x21f   : > { %v1066_v55 = vpop.eup %1065 }
 0x220   : > { %v391_v56 = vadd.f32 1.0, %v1066_v55 }
 0x222   : > { %1067 = vrcp.f32 %v391_v56  ;;  %v406_v62 = vand.u32 2147483648, %v391_v56  ;;  %v404_v4 = vand.u32 2147483647, %v391_v56  ;;  %vm400_vm6 = vweird.f32 %v391_v56 }
 0x224   : > { %v407_v12 = vor.u32 1.1754944e-38, %v406_v62  ;;  %vm405_vm8 = vcmp.eq.f32.partialorder %v404_v4, 8.507059e+37  ;;  %v590_v62 = vld [vmem:[#allocation5 + $0x1f0] sm:$0xff]  ;;  %v556_v4 = vld [vmem:[#allocation5 + $0xe0] sm:$0xff] }
 0x225   : > { %676 = vmatpush.msra.mxu3 %v590_v62  ;;  %v562_v62 = vld [vmem:[#allocation5 + $0x110] sm:$0xff] }
 0x228   : > { %v1068_v57 = vpop.eup %1067 }
 0x229   : > { %v396_v58 = vmul.f32 %v1068_v57, %v391_v56  ;;  %vm401_vm5 = vweird.f32 %v1068_v57 }
 0x22a   : > { %v370_v59 = vpop.permute.xlu2 %369  ;;  %vm402_vm7 = vmor %vm400_vm6, %vm401_vm5 }
 0x22b   : > { %v378_v60 = vadd.f32 %v370_v59, %v356_v49  ;;  %v397_v61 = vsub.f32 1.0, %v396_v58  ;;  %v622_v59 = vld [vmem:[#allocation5 + $0x2f0] sm:$0xff] }
 0x22c   : > { %696 = vmatpush.msrb.mxu1 %v622_v59  ;;  %v594_v59 = vld [vmem:[#allocation5 + $0x210] sm:$0xff] }
 0x22d   : > { %v382_v63 = vsub.f32 0.0, %v378_v60  ;;  %v398_v3 = vmul.f32 %v1068_v57, %v397_v61  ;;  %v654_v60 = vld [vmem:[#allocation5 + $0x3f0] sm:$0xff] }
 0x22e   : > { %v558_v61 = vld [vmem:[#allocation5 + $0xf0] sm:$0xff]  ;;  %716 = vmatpush.msrb.mxu0 %v654_v60 }
 0x22f   : > { %v389_v6 = vmul.f32 1.442695, %v382_v63  ;;  %v399_v11 = vadd.f32 %v1068_v57, %v398_v3  ;;  %v620_v63 = vld [vmem:[#allocation5 + $0x2e0] sm:$0xff]  ;;  %656 = vmatpush.msra.mxu2 %v558_v61  ;;  %v626_v60 = vld [vmem:[#allocation5 + $0x310] sm:$0xff] }
 0x230   : > { %v652_v3 = vld [vmem:[#allocation5 + $0x3e0] sm:$0xff]  ;;  %697 = vmatpush.msrb.mxu1 %v620_v63  ;;  %v530_v61 = vld [vmem:[#allocation5 + $0x10] sm:$0xff] }
 0x231   : > { %1069 = vpow2.f32 %v389_v6  ;;  %v403_v13 = vsel %vm402_vm7, %v1068_v57, %v399_v11  ;;  %717 = vmatpush.msrb.mxu0 %v652_v3  ;;  %v588_v6 = vld [vmem:[#allocation5 + $0x1e0] sm:$0xff]  ;;  %v618_v11 = vld [vmem:[#allocation5 + $0x2d0] sm:$0xff]  ;;  %657 = vmatpush.msra.mxu2 %v556_v4  ;;  %v623_v4 = vld [vmem:[#allocation5 + $0x2f8] sm:$0xff] }
 0x232   : > { %v366_v14 = vpop.permute.xlu0 %365  ;;  %v408_v15 = vsel %vm405_vm8, %v407_v12, %v403_v13  ;;  %677 = vmatpush.msra.mxu3 %v588_v6  ;;  %v650_v12 = vld [vmem:[#allocation5 + $0x3d0] sm:$0xff]  ;;  %698 = vmatpush.msrb.mxu1 %v618_v11  ;;  %v592_v63 = vld [vmem:[#allocation5 + $0x200] sm:$0xff]  ;;  %v655_v6 = vld [vmem:[#allocation5 + $0x3f8] sm:$0xff] }
 0x233   : > { %v376_v16 = vadd.f32 %v366_v14, %v350_v47  ;;  %457 = vperm.xlu0 %1060, %v408_v15   ;;  %718 = vmatpush.msrb.mxu0 %v650_v12  ;;  %v554_v13 = vld [vmem:[#allocation5 + $0xd0] sm:$0xff]  ;;  %v616_v15 = vld [vmem:[#allocation5 + $0x2c0] sm:$0xff] }
 0x234   : > { %v586_v14 = vld [vmem:[#allocation5 + $0x1d0] sm:$0xff]  ;;  %658 = vmatpush.msra.mxu2 %v554_v13  ;;  %699 = vmatpush.msrb.mxu1 %v616_v15  ;;  %v624_v3 = vld [vmem:[#allocation5 + $0x300] sm:$0xff]  ;;  %v559_v13 = vld [vmem:[#allocation5 + $0xf8] sm:$0xff] }
 0x235   : > { %v380_v17 = vsub.f32 0.0, %v376_v16  ;;  %678 = vmatpush.msra.mxu3 %v586_v14  ;;  %v648_v16 = vld [vmem:[#allocation5 + $0x3c0] sm:$0xff]  ;;  %v591_v14 = vld [vmem:[#allocation5 + $0x1f8] sm:$0xff]  ;;  %v621_v15 = vld [vmem:[#allocation5 + $0x2e8] sm:$0xff] }
 0x236   : > { %719 = vmatpush.msrb.mxu0 %v648_v16  ;;  %v528_v11 = vld [vmem:[#allocation5] sm:$0xff]  ;;  %v653_v16 = vld [vmem:[#allocation5 + $0x3e8] sm:$0xff] }
 0x237   : > { %v1070_v18 = vpop.eup %1069  ;;  %v385_v19 = vmul.f32 1.442695, %v380_v17  ;;  %v552_v17 = vld [vmem:[#allocation5 + $0xc0] sm:$0xff] }
 0x238   : > { %v394_v20 = vadd.f32 1.0, %v1070_v18  ;;  %v584_v18 = vld [vmem:[#allocation5 + $0x1c0] sm:$0xff]  ;;  %659 = vmatpush.msra.mxu2 %v552_v17  ;;  %v557_v17 = vld [vmem:[#allocation5 + $0xe8] sm:$0xff] }
 0x239   : > { %1071 = vpow2.f32 %v385_v19  ;;  %v614_v19 = vld [vmem:[#allocation5 + $0x2b0] sm:$0xff]  ;;  %679 = vmatpush.msra.mxu3 %v584_v18  ;;  %v560_v12 = vld [vmem:[#allocation5 + $0x100] sm:$0xff]  ;;  %v589_v18 = vld [vmem:[#allocation5 + $0x1e8] sm:$0xff] }
 0x23a   : > { %v368_v21 = vpop.permute.xlu1 %367  ;;  %1073 = vrcp.f32 %v394_v20  ;;  %vm445_vm14 = vweird.f32 %v394_v20  ;;  %v449_v51 = vand.u32 2147483647, %v394_v20  ;;  %700 = vmatpush.msrb.mxu1 %v614_v19  ;;  %v619_v19 = vld [vmem:[#allocation5 + $0x2d8] sm:$0xff] }
 0x23b   : > { %v377_v22 = vadd.f32 %v368_v21, %v353_v48  ;;  %v451_v48 = vand.u32 2147483648, %v394_v20  ;;  %v550_v21 = vld [vmem:[#allocation5 + $0xb0] sm:$0xff] }
 0x23c   : > { %vm450_vm4 = vcmp.eq.f32.partialorder %v449_v51, 8.507059e+37  ;;  %660 = vmatpush.msra.mxu2 %v550_v21  ;;  %v598_v51 = vld [vmem:[#allocation5 + $0x230] sm:$0xff]  ;;  %v555_v21 = vld [vmem:[#allocation5 + $0xd8] sm:$0xff] }
 0x23d   : > { %v381_v23 = vsub.f32 0.0, %v377_v22  ;;  %v452_v55 = vor.u32 1.1754944e-38, %v451_v48  ;;  %v582_v22 = vld [vmem:[#allocation5 + $0x1b0] sm:$0xff]  ;;  %v632_v48 = vld [vmem:[#allocation5 + $0x340] sm:$0xff] }
 0x23e   : > { %680 = vmatpush.msra.mxu3 %v582_v22  ;;  %v587_v22 = vld [vmem:[#allocation5 + $0x1d8] sm:$0xff] }
 0x23f   : > { %v1072_v24 = vpop.eup %1071  ;;  %v387_v25 = vmul.f32 1.442695, %v381_v23  ;;  %v612_v23 = vld [vmem:[#allocation5 + $0x2a0] sm:$0xff] }
 0x240   : > { %v392_v26 = vadd.f32 1.0, %v1072_v24  ;;  %v1074_v27 = vpop.eup %1073  ;;  %v644_v24 = vld [vmem:[#allocation5 + $0x3a0] sm:$0xff]  ;;  %701 = vmatpush.msrb.mxu1 %v612_v23  ;;  %v617_v23 = vld [vmem:[#allocation5 + $0x2c8] sm:$0xff] }
 0x241   : > { %1075 = vpow2.f32 %v387_v25  ;;  %v441_v29 = vmul.f32 %v1074_v27, %v394_v20  ;;  %vm446_vm13 = vweird.f32 %v1074_v27  ;;  %v646_v20 = vld [vmem:[#allocation5 + $0x3b0] sm:$0xff]  ;;  %v548_v25 = vld [vmem:[#allocation5 + $0xa0] sm:$0xff] }
 0x242   : > { %1077 = vrcp.f32 %v392_v26  ;;  %v421_v35 = vand.u32 2147483648, %v392_v26  ;;  %v419_v37 = vand.u32 2147483647, %v392_v26  ;;  %vm415_vm10 = vweird.f32 %v392_v26  ;;  %vm447_vm0 = vmor %vm445_vm14, %vm446_vm13  ;;  %720 = vmatpush.msrb.mxu0 %v646_v20  ;;  %661 = vmatpush.msra.mxu2 %v548_v25  ;;  %v651_v20 = vld [vmem:[#allocation5 + $0x3d8] sm:$0xff]  ;;  %v553_v25 = vld [vmem:[#allocation5 + $0xc8] sm:$0xff] }
 0x243   : > { %v442_v34 = vsub.f32 1.0, %v441_v29  ;;  %v546_v29 = vld [vmem:[#allocation5 + $0x90] sm:$0xff] }
 0x244   : > { %v422_v41 = vor.u32 1.1754944e-38, %v421_v35  ;;  %vm420_vm12 = vcmp.eq.f32.partialorder %v419_v37, 8.507059e+37  ;;  %721 = vmatpush.msrb.mxu0 %v644_v24  ;;  %662 = vmatpush.msra.mxu2 %v546_v29  ;;  %v606_v35 = vld [vmem:[#allocation5 + $0x270] sm:$0xff]  ;;  %v649_v24 = vld [vmem:[#allocation5 + $0x3c8] sm:$0xff]  ;;  %v551_v29 = vld [vmem:[#allocation5 + $0xb8] sm:$0xff] }
 0x245   : > { %v443_v39 = vmul.f32 %v1074_v27, %v442_v34  ;;  %v576_v34 = vld [vmem:[#allocation5 + $0x180] sm:$0xff]  ;;  %v542_v37 = vld [vmem:[#allocation5 + $0x70] sm:$0xff] }
 0x247   : > { %v1076_v28 = vpop.eup %1075  ;;  %v444_v46 = vadd.f32 %v1074_v27, %v443_v39  ;;  %v604_v39 = vld [vmem:[#allocation5 + $0x260] sm:$0xff] }
 0x248   : > { %v1078_v30 = vpop.eup %1077  ;;  %v393_v31 = vadd.f32 1.0, %v1076_v28  ;;  %v642_v28 = vld [vmem:[#allocation5 + $0x390] sm:$0xff] }
 0x249   : > { %v411_v32 = vmul.f32 %v1078_v30, %v392_v26  ;;  %vm416_vm9 = vweird.f32 %v1078_v30  ;;  %v448_v53 = vsel %vm447_vm0, %v1074_v27, %v444_v46  ;;  %v580_v26 = vld [vmem:[#allocation5 + $0x1a0] sm:$0xff]  ;;  %v610_v27 = vld [vmem:[#allocation5 + $0x290] sm:$0xff]  ;;  %722 = vmatpush.msrb.mxu0 %v642_v28  ;;  %v647_v28 = vld [vmem:[#allocation5 + $0x3b8] sm:$0xff] }
 0x24a   : > { %1079 = vrcp.f32 %v393_v31  ;;  %vm417_vm11 = vmor %vm415_vm10, %vm416_vm9  ;;  %v436_v47 = vand.u32 2147483648, %v393_v31  ;;  %v434_v50 = vand.u32 2147483647, %v393_v31  ;;  %vm430_vm1 = vweird.f32 %v393_v31  ;;  %681 = vmatpush.msra.mxu3 %v580_v26  ;;  %702 = vmatpush.msrb.mxu1 %v610_v27  ;;  %v570_v46 = vld [vmem:[#allocation5 + $0x150] sm:$0xff]  ;;  %v585_v26 = vld [vmem:[#allocation5 + $0x1c8] sm:$0xff] }
 0x24b   : > { %v412_v33 = vsub.f32 1.0, %v411_v32  ;;  %v453_v58 = vsel %vm450_vm4, %v452_v55, %v448_v53  ;;  %v640_v32 = vld [vmem:[#allocation5 + $0x380] sm:$0xff]  ;;  %v534_v53 = vld [vmem:[#allocation5 + $0x30] sm:$0xff]  ;;  %v615_v27 = vld [vmem:[#allocation5 + $0x2b8] sm:$0xff] }
 0x24c   : > { %v437_v54 = vor.u32 1.1754944e-38, %v436_v47  ;;  %vm435_vm3 = vcmp.eq.f32.partialorder %v434_v50, 8.507059e+37  ;;  %723 = vmatpush.msrb.mxu0 %v640_v32  ;;  %v600_v47 = vld [vmem:[#allocation5 + $0x240] sm:$0xff]  ;;  %v645_v32 = vld [vmem:[#allocation5 + $0x3a8] sm:$0xff] }
 0x24d   : > { %v413_v36 = vmul.f32 %v1078_v30, %v412_v33  ;;  %v544_v33 = vld [vmem:[#allocation5 + $0x80] sm:$0xff] }
 0x24e   : > { %663 = vmatpush.msra.mxu2 %v544_v33  ;;  %v568_v50 = vld [vmem:[#allocation5 + $0x140] sm:$0xff]  ;;  %v549_v33 = vld [vmem:[#allocation5 + $0xa8] sm:$0xff] }
 0x24f   : > { %v414_v38 = vadd.f32 %v1078_v30, %v413_v36  ;;  %v638_v36 = vld [vmem:[#allocation5 + $0x370] sm:$0xff]  ;;  %v596_v55 = vld [vmem:[#allocation5 + $0x220] sm:$0xff] }
 0x250   : > { %v1080_v40 = vpop.eup %1079  ;;  %724 = vmatpush.msrb.mxu0 %v638_v36  ;;  %664 = vmatpush.msra.mxu2 %v542_v37  ;;  %v643_v36 = vld [vmem:[#allocation5 + $0x398] sm:$0xff] }
 0x251   : > { %v418_v42 = vsel %vm417_vm11, %v1078_v30, %v414_v38  ;;  %v426_v43 = vmul.f32 %v1080_v40, %v393_v31  ;;  %vm431_vm15 = vweird.f32 %v1080_v40  ;;  %v578_v30 = vld [vmem:[#allocation5 + $0x190] sm:$0xff]  ;;  %v608_v31 = vld [vmem:[#allocation5 + $0x280] sm:$0xff]  ;;  %v547_v37 = vld [vmem:[#allocation5 + $0x98] sm:$0xff] }
 0x252   : > { %v423_v44 = vsel %vm420_vm12, %v422_v41, %v418_v42  ;;  %vm432_vm2 = vmor %vm430_vm1, %vm431_vm15  ;;  %682 = vmatpush.msra.mxu3 %v578_v30  ;;  %703 = vmatpush.msrb.mxu1 %v608_v31  ;;  %v574_v38 = vld [vmem:[#allocation5 + $0x170] sm:$0xff]  ;;  %v540_v41 = vld [vmem:[#allocation5 + $0x60] sm:$0xff] }
 0x253   : > { %462 = vperm.xlu2 %1061, %v423_v44   ;;  %v427_v45 = vsub.f32 1.0, %v426_v43  ;;  %v572_v42 = vld [vmem:[#allocation5 + $0x160] sm:$0xff]  ;;  %v602_v43 = vld [vmem:[#allocation5 + $0x250] sm:$0xff]  ;;  %665 = vmatpush.msra.mxu2 %v540_v41  ;;  %v583_v30 = vld [vmem:[#allocation5 + $0x1b8] sm:$0xff] }
 0x254   : > { %683 = vmatpush.msra.mxu3 %v576_v34  ;;  %704 = vmatpush.msrb.mxu1 %v606_v35  ;;  %v634_v44 = vld [vmem:[#allocation5 + $0x350] sm:$0xff]  ;;  %v613_v31 = vld [vmem:[#allocation5 + $0x2a8] sm:$0xff]  ;;  %v611_v35 = vld [vmem:[#allocation5 + $0x298] sm:$0xff] }
 0x255   : > { %v428_v49 = vmul.f32 %v1080_v40, %v427_v45  ;;  %v538_v45 = vld [vmem:[#allocation5 + $0x50] sm:$0xff]  ;;  %v581_v34 = vld [vmem:[#allocation5 + $0x1a8] sm:$0xff] }
 0x256   : > { %684 = vmatpush.msra.mxu3 %v574_v38  ;;  %705 = vmatpush.msrb.mxu1 %v604_v39  ;;  %v579_v38 = vld [vmem:[#allocation5 + $0x198] sm:$0xff]  ;;  %v609_v39 = vld [vmem:[#allocation5 + $0x288] sm:$0xff] }
 0x257   : > { %v429_v52 = vadd.f32 %v1080_v40, %v428_v49  ;;  %v536_v49 = vld [vmem:[#allocation5 + $0x40] sm:$0xff]  ;;  %666 = vmatpush.msra.mxu2 %v538_v45  ;;  %v545_v41 = vld [vmem:[#allocation5 + $0x88] sm:$0xff]  ;;  %v543_v45 = vld [vmem:[#allocation5 + $0x78] sm:$0xff] }
 0x258   : > { %685 = vmatpush.msra.mxu3 %v572_v42  ;;  %706 = vmatpush.msrb.mxu1 %v602_v43  ;;  %v577_v42 = vld [vmem:[#allocation5 + $0x188] sm:$0xff]  ;;  %v607_v43 = vld [vmem:[#allocation5 + $0x278] sm:$0xff] }
 0x259   : > { %v433_v56 = vsel %vm432_vm2, %v1080_v40, %v429_v52  ;;  %v636_v40 = vld [vmem:[#allocation5 + $0x360] sm:$0xff]  ;;  %v630_v52 = vld [vmem:[#allocation5 + $0x330] sm:$0xff]  ;;  %667 = vmatpush.msra.mxu2 %v536_v49  ;;  %v541_v49 = vld [vmem:[#allocation5 + $0x68] sm:$0xff] }
 0x25a   : > { %v438_v57 = vsel %vm435_vm3, %v437_v54, %v433_v56  ;;  %725 = vmatpush.msrb.mxu0 %v636_v40  ;;  %686 = vmatpush.msra.mxu3 %v570_v46  ;;  %v566_v54 = vld [vmem:[#allocation5 + $0x130] sm:$0xff]  ;;  %v628_v56 = vld [vmem:[#allocation5 + $0x320] sm:$0xff]  ;;  %v641_v40 = vld [vmem:[#allocation5 + $0x388] sm:$0xff] }
 0x25b   : > { %467 = vperm.xlu1 %1062, %v438_v57   ;;  %472 = vperm.xlu2 %1061, %v453_v58   ;;  %v532_v57 = vld [vmem:[#allocation5 + $0x20] sm:$0xff]  ;;  %v575_v46 = vld [vmem:[#allocation5 + $0x178] sm:$0xff] }
 0x25c   : > { %726 = vmatpush.msrb.mxu0 %v634_v44  ;;  %707 = vmatpush.msrb.mxu1 %v600_v47  ;;  %v564_v58 = vld [vmem:[#allocation5 + $0x120] sm:$0xff]  ;;  %v639_v44 = vld [vmem:[#allocation5 + $0x378] sm:$0xff]  ;;  %v605_v47 = vld [vmem:[#allocation5 + $0x268] sm:$0xff] }
 0x25d   : > { %687 = vmatpush.msra.mxu3 %v568_v50  ;;  %668 = vmatpush.msra.mxu2 %v534_v53  ;;  %v573_v50 = vld [vmem:[#allocation5 + $0x168] sm:$0xff] }
 0x25e   : > { %727 = vmatpush.msrb.mxu0 %v632_v48  ;;  %708 = vmatpush.msrb.mxu1 %v598_v51  ;;  %v637_v48 = vld [vmem:[#allocation5 + $0x368] sm:$0xff]  ;;  %v603_v51 = vld [vmem:[#allocation5 + $0x258] sm:$0xff] }
 0x25f   : > { %688 = vmatpush.msra.mxu3 %v566_v54  ;;  %669 = vmatpush.msra.mxu2 %v532_v57  ;;  %v539_v54 = vld [vmem:[#allocation5 + $0x58] sm:$0xff]  ;;  %v633_v57 = vld [vmem:[#allocation5 + $0x348] sm:$0xff] }
 0x260   : > { %728 = vmatpush.msrb.mxu0 %v630_v52  ;;  %709 = vmatpush.msrb.mxu1 %v596_v55  ;;  %v635_v52 = vld [vmem:[#allocation5 + $0x358] sm:$0xff] }
 0x261   : > { %689 = vmatpush.msra.mxu3 %v564_v58  ;;  %670 = vmatpush.msra.mxu2 %v530_v61  ;;  %v571_v55 = vld [vmem:[#allocation5 + $0x158] sm:$0xff]  ;;  %v537_v58 = vld [vmem:[#allocation5 + $0x48] sm:$0xff] }
 0x262   : > { %729 = vmatpush.msrb.mxu0 %v628_v56  ;;  %710 = vmatpush.msrb.mxu1 %v594_v59  ;;  %v601_v56 = vld [vmem:[#allocation5 + $0x248] sm:$0xff]  ;;  %v631_v61 = vld [vmem:[#allocation5 + $0x338] sm:$0xff] }
 0x263   : > { %690 = vmatpush.msra.mxu3 %v562_v62  ;;  %671 = vmatpush.msra.mxu2 %v528_v11  ;;  %v569_v59 = vld [vmem:[#allocation5 + $0x148] sm:$0xff]  ;;  %v535_v62 = vld [vmem:[#allocation5 + $0x38] sm:$0xff] }
 0x264   : > { %730 = vmatpush.msrb.mxu0 %v626_v60  ;;  %711 = vmatpush.msrb.mxu1 %v592_v63  ;;  %v599_v60 = vld [vmem:[#allocation5 + $0x238] sm:$0xff]  ;;  %v533_v11 = vld [vmem:[#allocation5 + $0x28] sm:$0xff] }
 0x265   : > { %691 = vmatpush.msra.mxu3 %v560_v12  ;;  %736 = vmatpush.msrb.mxu2 %v559_v13  ;;  %v567_v63 = vld [vmem:[#allocation5 + $0x138] sm:$0xff]  ;;  %v565_v12 = vld [vmem:[#allocation5 + $0x128] sm:$0xff] }
 0x266   : > { %731 = vmatpush.msrb.mxu0 %v624_v3  ;;  %776 = vmatpush.msra.mxu1 %v623_v4  ;;  %v597_v3 = vld [vmem:[#allocation5 + $0x228] sm:$0xff]  ;;  %v595_v13 = vld [vmem:[#allocation5 + $0x218] sm:$0xff] }
 0x267   : > { %756 = vmatpush.msrb.mxu3 %v591_v14  ;;  %737 = vmatpush.msrb.mxu2 %v557_v17  ;;  %v629_v4 = vld [vmem:[#allocation5 + $0x328] sm:$0xff]  ;;  %v627_v14 = vld [vmem:[#allocation5 + $0x318] sm:$0xff] }
 0x268   : > { %796 = vmatpush.msra.mxu0 %v655_v6  ;;  %777 = vmatpush.msra.mxu1 %v621_v15  ;;  %v1229_v6 = vmov 32.0   ;;  %v531_v15 = vld [vmem:[#allocation5 + $0x18] sm:$0xff]  ;;  %v593_v17 = vld [vmem:[#allocation5 + $0x208] sm:$0xff] }
 0x269   : > { %757 = vmatpush.msrb.mxu3 %v589_v18  ;;  %738 = vmatpush.msrb.mxu2 %v555_v21  ;;  %1081 = vrcp.f32 %v1229_v6  ;;  %v625_v18 = vld [vmem:[#allocation5 + $0x308] sm:$0xff] }
 0x26a   : > { %797 = vmatpush.msra.mxu0 %v653_v16  ;;  %778 = vmatpush.msra.mxu1 %v619_v19  ;;  %v563_v16 = vld [vmem:[#allocation5 + $0x118] sm:$0xff]  ;;  %v561_v21 = vld [vmem:[#allocation5 + $0x108] sm:$0xff] }
 0x26b   : > { %758 = vmatpush.msrb.mxu3 %v587_v22  ;;  %739 = vmatpush.msrb.mxu2 %v553_v25 }
 0x26c   : > { %798 = vmatpush.msra.mxu0 %v651_v20  ;;  %779 = vmatpush.msra.mxu1 %v617_v23  ;;  %v529_v20 = vld [vmem:[#allocation5 + $0x8] sm:$0xff] }
 0x26d   : > { %759 = vmatpush.msrb.mxu3 %v585_v26  ;;  %740 = vmatpush.msrb.mxu2 %v551_v29 }
 0x26e   : > { %799 = vmatpush.msra.mxu0 %v649_v24  ;;  %780 = vmatpush.msra.mxu1 %v615_v27 }
 0x26f   : > { %760 = vmatpush.msrb.mxu3 %v583_v30  ;;  %741 = vmatpush.msrb.mxu2 %v549_v33  ;;  %v1082_v23 = vpop.eup %1081 }
 0x270   : > { %800 = vmatpush.msra.mxu0 %v647_v28  ;;  %781 = vmatpush.msra.mxu1 %v613_v31  ;;  %v502_v30 = vmul.f32 32.0, %v1082_v23  ;;  %vm506_vm5 = vweird.f32 %v1082_v23 }
 0x271   : > { %761 = vmatpush.msrb.mxu3 %v581_v34  ;;  %742 = vmatpush.msrb.mxu2 %v547_v37 }
 0x272   : > { %801 = vmatpush.msra.mxu0 %v645_v32  ;;  %782 = vmatpush.msra.mxu1 %v611_v35  ;;  %v503_v35 = vsub.f32 1.0, %v502_v30 }
 0x273   : > { %762 = vmatpush.msrb.mxu3 %v579_v38  ;;  %743 = vmatpush.msrb.mxu2 %v545_v41 }
 0x274   : > { %802 = vmatpush.msra.mxu0 %v643_v36  ;;  %783 = vmatpush.msra.mxu1 %v609_v39 }
 0x275   : > { %763 = vmatpush.msrb.mxu3 %v577_v42  ;;  %744 = vmatpush.msrb.mxu2 %v543_v45 }
 0x276   : > { %803 = vmatpush.msra.mxu0 %v641_v40  ;;  %784 = vmatpush.msra.mxu1 %v607_v43  ;;  %v504_v43 = vmul.f32 %v1082_v23, %v503_v35 }
 0x277   : > { %764 = vmatpush.msrb.mxu3 %v575_v46  ;;  %745 = vmatpush.msrb.mxu2 %v541_v49 }
 0x278   : > { %804 = vmatpush.msra.mxu0 %v639_v44  ;;  %785 = vmatpush.msra.mxu1 %v605_v47 }
 0x279   : > { %765 = vmatpush.msrb.mxu3 %v573_v50  ;;  %746 = vmatpush.msrb.mxu2 %v539_v54 }
 0x27a   : > { %805 = vmatpush.msra.mxu0 %v637_v48  ;;  %786 = vmatpush.msra.mxu1 %v603_v51 }
 0x27b   : > { %766 = vmatpush.msrb.mxu3 %v571_v55  ;;  %747 = vmatpush.msrb.mxu2 %v537_v58 }
 0x27c   : > { %806 = vmatpush.msra.mxu0 %v635_v52  ;;  %787 = vmatpush.msra.mxu1 %v601_v56  ;;  %v505_v52 = vadd.f32 %v1082_v23, %v504_v43 }
 0x27d   : > { %767 = vmatpush.msrb.mxu3 %v569_v59  ;;  %748 = vmatpush.msrb.mxu2 %v535_v62 }
 0x27e   : > { %807 = vmatpush.msra.mxu0 %v633_v57  ;;  %788 = vmatpush.msra.mxu1 %v599_v60 }
 0x27f   : > { %768 = vmatpush.msrb.mxu3 %v567_v63  ;;  %749 = vmatpush.msrb.mxu2 %v533_v11 }
 0x280   : > { %808 = vmatpush.msra.mxu0 %v631_v61  ;;  %789 = vmatpush.msra.mxu1 %v597_v3  ;;  %v507_v61 = vsel %vm506_vm5, %v1082_v23, %v505_v52 }
 0x281   : > { %769 = vmatpush.msrb.mxu3 %v565_v12  ;;  %750 = vmatpush.msrb.mxu2 %v531_v15 }
 0x282   : > { %809 = vmatpush.msra.mxu0 %v629_v4  ;;  %790 = vmatpush.msra.mxu1 %v595_v13 }
 0x283   : > { %770 = vmatpush.msrb.mxu3 %v563_v16  ;;  %751 = vmatpush.msrb.mxu2 %v529_v20 }
 0x284   : > { %810 = vmatpush.msra.mxu0 %v627_v14  ;;  %791 = vmatpush.msra.mxu1 %v593_v17 }
 0x285   : > { %771 = vmatpush.msrb.mxu3 %v561_v21 }
 0x286   : > { %811 = vmatpush.msra.mxu0 %v625_v18 }
 0x2a5   : > { %v458_v22 = vpop.permute.xlu0 %457 }
 0x2a6   : > { %v1434_v28 = vmul.f32 %v458_v22, %v1388_v9  ;;  %v1437_v29 = vmul.f32 %v458_v22, %v1390_v10 }
 0x2ad   : > { %v463_v53 = vpop.permute.xlu2 %462 }
 0x2ae   : > { %v1422_v24 = vmul.f32 %v463_v53, %v1384_v7  ;;  %v1425_v25 = vmul.f32 %v463_v53, %v1386_v8 }
 0x2b0   : > { %v483_v8 = vadd.f32 %v1422_v24, %v1434_v28 }
 0x2b5   : > { %v473_v19 = vpop.permute.xlu2 %472 }
 0x2b6   : > { %v1428_v26 = vmul.f32 %v473_v19, %v1370_v0  ;;  %v1431_v27 = vmul.f32 %v473_v19, %v1372_v1  ;;  %v492_v0 = vadd.f32 %v1425_v25, %v1437_v29 }
 0x2b8   : > { %v511_v9 = vmax.f32 %v1422_v24, %v1428_v26  ;;  %v520_v10 = vmax.f32 %v1425_v25, %v1431_v27 }
 0x2cd   : > { %v468_v7 = vpop.permute.xlu1 %467 }
 0x2ce   : > { %v1444_v31 = vmul.f32 %v468_v7, %v1374_v2  ;;  %v1447_v1 = vmul.f32 %v468_v7, %v1380_v5 }
 0x2d0   : > { %v484_v32 = vadd.f32 %v483_v8, %v1444_v31  ;;  %v493_v33 = vadd.f32 %v492_v0, %v1447_v1  ;;  %v510_v34 = vmax.f32 %v1434_v28, %v1444_v31  ;;  %v519_v2 = vmax.f32 %v1437_v29, %v1447_v1 }
 0x2d2   : > { %v485_v5 = vadd.f32 %v484_v32, %v1428_v26  ;;  %v494_v36 = vadd.f32 %v493_v33, %v1431_v27  ;;  %v512_v37 = vmax.f32 %v510_v34, %v511_v9  ;;  %v521_v38 = vmax.f32 %v519_v2, %v520_v10 }
 0x2d4   : > { %v486_v39 = vrot.slane %v485_v5, 4  ;;  %v495_v40 = vrot.slane %v494_v36, 4  ;;  %v513_v41 = vrot.slane %v512_v37, 4  ;;  %v522_v42 = vrot.slane %v521_v38, 4 }
 0x2d6   : > { %v514_v44 = vmax.f32 %v512_v37, %v513_v41  ;;  %v523_v45 = vmax.f32 %v521_v38, %v522_v42  ;;  %v487_v46 = vadd.f32 %v486_v39, %v485_v5  ;;  %v496_v47 = vadd.f32 %v495_v40, %v494_v36 }
 0x2d8   : > { %v515_v48 = vrot.slane %v514_v44, 2  ;;  %v524_v49 = vrot.slane %v523_v45, 2  ;;  %v488_v50 = vrot.slane %v487_v46, 2  ;;  %v497_v51 = vrot.slane %v496_v47, 2 }
 0x2da   : > { %v516_v53 = vmax.f32 %v514_v44, %v515_v48  ;;  %v525_v54 = vmax.f32 %v523_v45, %v524_v49  ;;  %v489_v55 = vadd.f32 %v488_v50, %v487_v46  ;;  %v498_v56 = vadd.f32 %v497_v51, %v496_v47 }
 0x2dc   : > { %v517_v57 = vrot.slane %v516_v53, 1  ;;  %v526_v58 = vrot.slane %v525_v54, 1  ;;  %v490_v59 = vrot.slane %v489_v55, 1  ;;  %v499_v60 = vrot.slane %v498_v56, 1 }
 0x2de   : > { %v518_v62 = vmax.f32 %v516_v53, %v517_v57  ;;  %v527_v63 = vmax.f32 %v525_v54, %v526_v58  ;;  %v491_v3 = vadd.f32 %v490_v59, %v489_v55  ;;  %v500_v4 = vadd.f32 %v499_v60, %v498_v56 }
 0x2e0   : > { %712 = vmatmul.f32.vlgmr.msrb.gmra.mxu1 %v518_v62  ;;  %732 = vmatmul.f32.vlgmr.msrb.gmra.mxu0 %v527_v63  ;;  %v508_v6 = vmul.f32 %v507_v61, %v491_v3  ;;  %v509_v11 = vmul.f32 %v507_v61, %v500_v4 }
 0x2e2   : > { %672 = vmatmul.f32.vlgmr.msra.gmra.mxu2 %v508_v6  ;;  %692 = vmatmul.f32.vlgmr.msra.gmra.mxu3 %v509_v11 }
 0x2e8   : > { %792 = vmatmul.f32.vlgmr.msra.gmra.mxu1 %v518_v62  ;;  %812 = vmatmul.f32.vlgmr.msra.gmra.mxu0 %v527_v63 }
 0x2ea   : > { %752 = vmatmul.f32.vlgmr.msrb.gmra.mxu2 %v508_v6  ;;  %772 = vmatmul.f32.vlgmr.msrb.gmra.mxu3 %v509_v11 }
 0x35d   : > { %v713_v12 = vpop.f32.mrf.mxu1  ;;  %v733_v16 = vpop.f32.mrf.mxu0 }
 0x365   : > { %v673_v13 = vpop.f32.mrf.mxu2  ;;  %v693_v14 = vpop.f32.mrf.mxu3 }
 0x366   : > { %v694_v15 = vadd.f32 %v693_v14, %v673_v13  ;;  %v793_v7 = vpop.f32.mrf.mxu1  ;;  %v813_v8 = vpop.f32.mrf.mxu0 }
 0x368   : > { %v714_v17 = vadd.f32 %v713_v12, %v694_v15 }
 0x36a   : > { %v734_v18 = vadd.f32 %v733_v16, %v714_v17 }
 0x36c   : > { %v816_v19 = vsub.f32 0.0, %v734_v18 }
 0x36d   : > { %v753_v20 = vpop.f32.mrf.mxu2  ;;  %v773_v21 = vpop.f32.mrf.mxu3 }
 0x36e   : > { %v818_v22 = vmul.f32 1.442695, %v816_v19  ;;  %v774_v23 = vadd.f32 %v773_v21, %v753_v20 }
 0x370   : > { %1083 = vpow2.f32 %v818_v22  ;;  %v794_v30 = vadd.f32 %v793_v7, %v774_v23 }
 0x372   : > { %v814_v0 = vadd.f32 %v813_v8, %v794_v30 }
 0x374   : > { %v817_v9 = vsub.f32 0.0, %v814_v0 }
 0x376   : > { %v1084_v10 = vpop.eup %1083  ;;  %v820_v32 = vmul.f32 1.442695, %v817_v9 }
 0x377   : > { %v822_v33 = vadd.f32 1.0, %v1084_v10 }
 0x378   : > { %1085 = vpow2.f32 %v820_v32 }
 0x379   : > { %1087 = vrcp.f32 %v822_v33  ;;  %v835_v37 = vand.u32 2147483648, %v822_v33  ;;  %v833_v39 = vand.u32 2147483647, %v822_v33  ;;  %vm829_vm7 = vweird.f32 %v822_v33 }
 0x37b   : > { %v836_v42 = vor.u32 1.1754944e-38, %v835_v37  ;;  %vm834_vm9 = vcmp.eq.f32.partialorder %v833_v39, 8.507059e+37 }
 0x37e   : > { %v1086_v34 = vpop.eup %1085 }
 0x37f   : > { %v1088_v2 = vpop.eup %1087  ;;  %v823_v35 = vadd.f32 1.0, %v1086_v34 }
 0x380   : > { %v825_v5 = vmul.f32 %v1088_v2, %v822_v33  ;;  %vm830_vm6 = vweird.f32 %v1088_v2 }
 0x381   : > { %1089 = vrcp.f32 %v823_v35  ;;  %vm831_vm8 = vmor %vm829_vm7, %vm830_vm6  ;;  %v850_v51 = vand.u32 2147483648, %v823_v35  ;;  %v848_v54 = vand.u32 2147483647, %v823_v35  ;;  %vm844_vm11 = vweird.f32 %v823_v35 }
 0x382   : > { %v826_v36 = vsub.f32 1.0, %v825_v5 }
 0x383   : > { %vm849_vm13 = vcmp.eq.f32.partialorder %v848_v54, 8.507059e+37 }
 0x384   : > { %v827_v38 = vmul.f32 %v1088_v2, %v826_v36 }
 0x386   : > { %v828_v40 = vadd.f32 %v1088_v2, %v827_v38 }
 0x387   : > { %v1090_v41 = vpop.eup %1089 }
 0x388   : > { %v832_v43 = vsel %vm831_vm8, %v1088_v2, %v828_v40  ;;  %v840_v44 = vmul.f32 %v1090_v41, %v823_v35  ;;  %vm845_vm10 = vweird.f32 %v1090_v41 }
 0x389   : > { %v837_v45 = vsel %vm834_vm9, %v836_v42, %v832_v43  ;;  %vm846_vm12 = vmor %vm844_vm11, %vm845_vm10 }
 0x38a   : > { %v854_v46 = vperm.slane %v837_v45, 0  ;;  %v841_v47 = vsub.f32 1.0, %v840_v44 }
 0x38c   : > { %v856_v48 = vmul.f32 %v854_v46, %v1434_v28  ;;  %v858_v49 = vmul.f32 %v854_v46, %v1422_v24  ;;  %v860_v50 = vmul.f32 %v854_v46, %v1444_v31  ;;  %v862_v52 = vmul.f32 %v854_v46, %v1428_v26 }
 0x38d   : > { %v842_v53 = vmul.f32 %v1090_v41, %v841_v47  ;;  %v851_v28 = vor.u32 1.1754944e-38, %v850_v51 }
 0x38e   : > { %864 = vst [vmem:[%s234_s14] sm:$0xff] %v856_v48 }
 0x38f   : > { %866 = vst [vmem:[%s234_s14 + $0x10] sm:$0xff] %v858_v49  ;;  %v843_v55 = vadd.f32 %v1090_v41, %v842_v53 }
 0x390   : > { %868 = vst [vmem:[%s234_s14 + $0x20] sm:$0xff] %v860_v50 }
 0x391   : > { %870 = vst [vmem:[%s234_s14 + $0x30] sm:$0xff] %v862_v52  ;;  %v847_v24 = vsel %vm846_vm12, %v1090_v41, %v843_v55 }
 0x392   : > { %v852_v26 = vsel %vm849_vm13, %v851_v28, %v847_v24 }
 0x393   : > { %v855_v31 = vperm.slane %v852_v26, 0 }
 0x395   : > { %v857_v56 = vmul.f32 %v855_v31, %v1437_v29  ;;  %v859_v57 = vmul.f32 %v855_v31, %v1425_v25  ;;  %v861_v58 = vmul.f32 %v855_v31, %v1447_v1  ;;  %v863_v59 = vmul.f32 %v855_v31, %v1431_v27 }
 0x397   : > { %865 = vst [vmem:[%s234_s14 + $0x8] sm:$0xff] %v857_v56 }
 0x398   : > { %867 = vst [vmem:[%s234_s14 + $0x18] sm:$0xff] %v859_v57 }
 0x399   : > { %869 = vst [vmem:[%s234_s14 + $0x28] sm:$0xff] %v861_v58 }
 0x39a   : > { %871 = vst [vmem:[%s234_s14 + $0x38] sm:$0xff] %v863_v59 }
 0x39b   : > { %1178 = shalt.err (!%p1175_p10)
}
 0x39c   : > { %s1230_s10 = smov 256   ;;  %s1231_s13 = smov 16  }
 0x39d   : > { %1001 = dma.vmem_to_hbm [thread:$0]  (%p1326_p3), %s886_s26, 1024, %s888_s24, %s873_s19, %s1230_s10, %s1230_s10, %s1231_s13  }
 0x39e PF: > { %s902_s12 = sand.u32 1, %s1209_s15   ;;  %p1514_p12 = scmp.ge.s32.totalorder %s1221_s18, 2 }
 0x39f   : > { %s903_s14 = scalar_lea.sflag [#allocation4], %s902_s12 }
 0x3a0   : > { %p1012_p13 = pnand %p1514_p12, %p1292_p6 }
 0x3a2   : > { %p1013_p0 = pneg %p1012_p13 }
 0x3a4   : > { %1204 = dma.done.wait (%p1013_p0), %s903_s14, 1024  }
 0x3a5   : > { %1206 = vsyncadd (%p1013_p0), %s903_s14, 4294966272  ;;  %p18_p5 = scmp.ge.s32.totalorder %s1310_s29, 4   ;;  %s1515_s15 = smov %s1213_s16 }
 0x3a6   : > { %s1516_s16 = smov %s1217_s17  ;;  %s1517_s17 = smov %s1322_s8 }
 0x3a7   : > { %s1518_s18 = smov %s1310_s29  ;;  %20 = sbr.rel (!%p18_p5) target bundleno = 6 (0x6), region = 85 }
 0x3ac   :  { %909 = vsyncpa [#allocation3], 1 }
 0x3ad   :  { %911 = vsyncpa [#allocation3 + $0x1], 1 }
 0x3ae   :  { %912 = vsyncpa [#allocation6], 1 }
 0x3af   :  { %913 = vsyncpa [#allocation4], 1 }
 0x3b0   :  { %915 = vsyncpa [#allocation4 + $0x1], 1 }

</bundles_post_ra>
